<compile_context>
chip_gen: v6e
topology: v6e:2x2x1
jax: 0.10.0
libtpu: 0.0.40
codegen_flags: <defaults>
</compile_context>

<pallas_src>
import functools

import jax
import jax.numpy as jnp
from jax.experimental import pallas as pl
from jax.experimental.pallas import tpu as pltpu


def _round_up(x, m):
    return (x + m - 1) // m * m


def _disc_net_kernel(t_ref, x_ref,
                     w1t_ref, w1x_ref, b1_ref,
                     w2_ref, b2_ref,
                     w3_ref, b3_ref,
                     wl_ref, bl_ref,
                     o_ref, *, h, TT):
    t = t_ref[...]                                    # (TB, 1)
    x = x_ref[...]                                    # (TB, dim)

    # lin1 on concat([t - TT/2, inp], 1) without materializing the concat.
    z1 = jnp.dot(x, w1x_ref[...], preferred_element_type=jnp.float32)
    z1 = z1 + (t - TT * 0.5) * w1t_ref[...] + b1_ref[...]
    o1 = jnp.tanh(z1)

    # out = act(out + h * lin2(out))
    z2 = jnp.dot(o1, w2_ref[...], preferred_element_type=jnp.float32) + b2_ref[...]
    o2 = jnp.tanh(o1 + h * z2)

    # out = act(out + h * lin3(out))
    z3 = jnp.dot(o2, w3_ref[...], preferred_element_type=jnp.float32) + b3_ref[...]
    o3 = jnp.tanh(o2 + h * z3)

    # out = linlast(out);  c1 = (TT - t) / TT;  return c1 * out
    out = jnp.dot(o3, wl_ref[...], preferred_element_type=jnp.float32) + bl_ref[...]
    c1 = (TT - t) * (1.0 / TT)
    o_ref[...] = c1 * out


def disc_net_forward(t, inp, params, *, h, TT, block_batch=1024):
    """Pallas implementation of DiscNet.forward (act_func = tanh).

    t   : (B, 1) float32   (raw, un-normalized time)
    inp : (B, dim) float32
    params: dict with w1,b1,w2,b2,w3,b3,wl,bl; weights stored (in, out).
    """
    B, dim = inp.shape
    ns = params["w2"].shape[0]

    t = t.reshape(B, 1).astype(jnp.float32)
    inp = inp.astype(jnp.float32)

    # Batch tile: multiple of 8 sublanes, capped at block_batch; pad the tail.
    TB = min(int(block_batch), _round_up(B, 8))
    B_pad = _round_up(B, TB)
    if B_pad != B:
        t = jnp.pad(t, ((0, B_pad - B), (0, 0)))
        inp = jnp.pad(inp, ((0, B_pad - B), (0, 0)))
    num_tiles = B_pad // TB

    # Split lin1's weight into its time row and feature rows (tiny, one-off).
    w1 = params["w1"]
    w1_t = w1[:1, :]       # (1, ns)
    w1_x = w1[1:, :]       # (dim, ns)

    batch_spec_t = pl.BlockSpec((TB, 1), lambda i: (i, 0))
    batch_spec_x = pl.BlockSpec((TB, dim), lambda i: (i, 0))

    def const_spec(shape):   # weights/biases: same block every grid step
        return pl.BlockSpec(shape, lambda i: (0, 0))

    kernel = functools.partial(_disc_net_kernel, h=float(h), TT=float(TT))

    flops = 2 * B_pad * (dim * ns + 2 * ns * ns + ns)
    bytes_accessed = 4 * (B_pad * (dim + 2)
                          + (dim + 1) * ns + 2 * ns * ns + ns + 3 * ns + 1)
    cost = pl.CostEstimate(flops=flops,
                           transcendentals=3 * B_pad * ns,
                           bytes_accessed=bytes_accessed)

    out = pl.pallas_call(
        kernel,
        out_shape=jax.ShapeDtypeStruct((B_pad, 1), jnp.float32),
        grid_spec=pltpu.PrefetchScalarGridSpec(
            num_scalar_prefetch=0,
            grid=(num_tiles,),
            in_specs=[
                batch_spec_t,                # t
                batch_spec_x,                # inp
                const_spec((1, ns)),         # w1 time row
                const_spec((dim, ns)),       # w1 feature rows
                const_spec((1, ns)),         # b1
                const_spec((ns, ns)),        # w2
                const_spec((1, ns)),         # b2
                const_spec((ns, ns)),        # w3
                const_spec((1, ns)),         # b3
                const_spec((ns, 1)),         # wl
                const_spec((1, 1)),          # bl
            ],
            out_specs=pl.BlockSpec((TB, 1), lambda i: (i, 0)),
        ),
        compiler_params=pltpu.CompilerParams(
            dimension_semantics=("parallel",)),
        cost_estimate=cost,
    )(t, inp, w1_t, w1_x, params["b1"],
      params["w2"], params["b2"],
      params["w3"], params["b3"],
      params["wl"], params["bl"])

    return out[:B]


def init_params(key, dim, ns):
    """PyTorch-Linear-style init: U(-1/sqrt(fan_in), 1/sqrt(fan_in)).

    Weights are stored (in_features, out_features) — transposed relative to
    torch.nn.Linear.weight — so the kernel computes x @ W + b.
    """
    def linear(k, fan_in, fan_out):
        kw, kb = jax.random.split(k)
        bound = 1.0 / jnp.sqrt(fan_in)
        w = jax.random.uniform(kw, (fan_in, fan_out), jnp.float32, -bound, bound)
        b = jax.random.uniform(kb, (1, fan_out), jnp.float32, -bound, bound)
        return w, b

    k1, k2, k3, k4 = jax.random.split(key, 4)
    w1, b1 = linear(k1, dim + 1, ns)
    w2, b2 = linear(k2, ns, ns)
    w3, b3 = linear(k3, ns, ns)
    wl, bl = linear(k4, ns, 1)
    return dict(w1=w1, b1=b1, w2=w2, b2=b2, w3=w3, b3=b3, wl=wl, bl=bl)


def disc_net_reference(t, inp, params, *, h, TT):
    """Pure-JAX reference mirroring the PyTorch forward (act = tanh)."""
    B = inp.shape[0]
    t = t.reshape(B, 1)
    x = jnp.concatenate([t - TT / 2.0, inp], axis=1)
    o = jnp.tanh(x @ params["w1"] + params["b1"])
    o = jnp.tanh(o + h * (o @ params["w2"] + params["b2"]))
    o = jnp.tanh(o + h * (o @ params["w3"] + params["b3"]))
    o = o @ params["wl"] + params["bl"]
    c1 = (TT - t) / TT
    return c1 * o


if __name__ == "__main__":
    B, dim, ns = 8, 4, 32
    h, TT = 0.1, 1.0

    key = jax.random.PRNGKey(0)
    k_t, k_x, k_p = jax.random.split(key, 3)

    t = jax.random.uniform(k_t, (B, 1), jnp.float32, 0.0, TT)
    inp = jax.random.normal(k_x, (B, dim), jnp.float32)
    params = init_params(k_p, dim, ns)

    out = jax.block_until_ready(disc_net_forward(t, inp, params, h=h, TT=TT))
    ref = disc_net_reference(t, inp, params, h=h, TT=TT)
    assert out.shape == (B, 1)
    assert jnp.allclose(out, ref, atol=1e-5, rtol=1e-5), "mismatch vs reference (small batch)"

    # Larger, non-tile-multiple batch exercises the grid + tail-padding path.
    B2 = 2500
    k_t2, k_x2 = jax.random.split(jax.random.PRNGKey(1))
    t2 = jax.random.uniform(k_t2, (B2, 1), jnp.float32, 0.0, TT)
    inp2 = jax.random.normal(k_x2, (B2, dim), jnp.float32)
    out2 = jax.block_until_ready(disc_net_forward(t2, inp2, params, h=h, TT=TT))
    ref2 = disc_net_reference(t2, inp2, params, h=h, TT=TT)
    assert out2.shape == (B2, 1)
    assert jnp.allclose(out2, ref2, atol=1e-5, rtol=1e-5), "mismatch vs reference (tiled batch)"

    # TODO(synk): act_func is a constructor argument in PyTorch; fixed to tanh here.
    print("KERNEL_OK")
</pallas_src>

<mosaic_0001>
module attributes {stable_mosaic.version = 11 : i64} {
  func.func @_disc_net_kernel(%arg0: i32, %arg1: memref<8x1xf32, #tpu.memory_space<vmem>>, %arg2: memref<8x4xf32, #tpu.memory_space<vmem>>, %arg3: memref<1x32xf32, #tpu.memory_space<vmem>>, %arg4: memref<4x32xf32, #tpu.memory_space<vmem>>, %arg5: memref<1x32xf32, #tpu.memory_space<vmem>>, %arg6: memref<32x32xf32, #tpu.memory_space<vmem>>, %arg7: memref<1x32xf32, #tpu.memory_space<vmem>>, %arg8: memref<32x32xf32, #tpu.memory_space<vmem>>, %arg9: memref<1x32xf32, #tpu.memory_space<vmem>>, %arg10: memref<32x1xf32, #tpu.memory_space<vmem>>, %arg11: memref<1x1xf32, #tpu.memory_space<vmem>>, %arg12: memref<8x1xf32, #tpu.memory_space<vmem>>) attributes {dimension_semantics = [#tpu.dimension_semantics<parallel>], iteration_bounds = array<i64: 1>, scalar_prefetch = 0 : i64, scratch_operands = 0 : i64, tpu.core_type = #tpu.core_type<tc>, window_params = [{transform_indices = @transform_0, window_bounds = array<i64: 8, 1>}, {transform_indices = @transform_1, window_bounds = array<i64: 8, 4>}, {pipeline_mode = #tpu.pipeline_mode<synchronous>, transform_indices = @transform_2, window_bounds = array<i64: 1, 32>}, {pipeline_mode = #tpu.pipeline_mode<synchronous>, transform_indices = @transform_3, window_bounds = array<i64: 4, 32>}, {pipeline_mode = #tpu.pipeline_mode<synchronous>, transform_indices = @transform_4, window_bounds = array<i64: 1, 32>}, {pipeline_mode = #tpu.pipeline_mode<synchronous>, transform_indices = @transform_5, window_bounds = array<i64: 32, 32>}, {pipeline_mode = #tpu.pipeline_mode<synchronous>, transform_indices = @transform_6, window_bounds = array<i64: 1, 32>}, {pipeline_mode = #tpu.pipeline_mode<synchronous>, transform_indices = @transform_7, window_bounds = array<i64: 32, 32>}, {pipeline_mode = #tpu.pipeline_mode<synchronous>, transform_indices = @transform_8, window_bounds = array<i64: 1, 32>}, {pipeline_mode = #tpu.pipeline_mode<synchronous>, transform_indices = @transform_9, window_bounds = array<i64: 32, 1>}, {pipeline_mode = #tpu.pipeline_mode<synchronous>, transform_indices = @transform_10, window_bounds = array<i64: 1, 1>}, {transform_indices = @transform_11, window_bounds = array<i64: 8, 1>}]} {
    %c0 = arith.constant 0 : index
    %c0_0 = arith.constant 0 : index
    %0 = vector.load %arg1[%c0, %c0_0] : memref<8x1xf32, #tpu.memory_space<vmem>>, vector<8x1xf32>
    %c0_1 = arith.constant 0 : index
    %c0_2 = arith.constant 0 : index
    %1 = vector.load %arg2[%c0_1, %c0_2] : memref<8x4xf32, #tpu.memory_space<vmem>>, vector<8x4xf32>
    %c0_3 = arith.constant 0 : index
    %c0_4 = arith.constant 0 : index
    %2 = vector.load %arg4[%c0_3, %c0_4] : memref<4x32xf32, #tpu.memory_space<vmem>>, vector<4x32xf32>
    %cst = arith.constant dense<0.000000e+00> : vector<8x32xf32>
    %3 = tpu.matmul %1, %2, %cst {dimension_numbers = #tpu.dot_dimension_numbers<[1], [0], [0], [1], [0, 0, 1, 1], [], []>} : vector<8x4xf32>, vector<4x32xf32>, vector<8x32xf32> -> vector<8x32xf32>
    %cst_5 = arith.constant 5.000000e-01 : f32
    %4 = vector.broadcast %cst_5 : f32 to vector<8x1xf32>
    %5 = arith.subf %0, %4 : vector<8x1xf32>
    %c0_6 = arith.constant 0 : index
    %c0_7 = arith.constant 0 : index
    %6 = vector.load %arg3[%c0_6, %c0_7] : memref<1x32xf32, #tpu.memory_space<vmem>>, vector<1x32xf32>
    %7 = vector.broadcast %5 : vector<8x1xf32> to vector<8x32xf32>
    %8 = vector.broadcast %6 : vector<1x32xf32> to vector<8x32xf32>
    %9 = arith.mulf %7, %8 : vector<8x32xf32>
    %10 = arith.addf %3, %9 : vector<8x32xf32>
    %c0_8 = arith.constant 0 : index
    %c0_9 = arith.constant 0 : index
    %11 = vector.load %arg5[%c0_8, %c0_9] : memref<1x32xf32, #tpu.memory_space<vmem>>, vector<1x32xf32>
    %12 = vector.broadcast %11 : vector<1x32xf32> to vector<8x32xf32>
    %13 = arith.addf %10, %12 : vector<8x32xf32>
    %14 = math.tanh %13 : vector<8x32xf32>
    %c0_10 = arith.constant 0 : index
    %c0_11 = arith.constant 0 : index
    %15 = vector.load %arg6[%c0_10, %c0_11] : memref<32x32xf32, #tpu.memory_space<vmem>>, vector<32x32xf32>
    %cst_12 = arith.constant dense<0.000000e+00> : vector<8x32xf32>
    %16 = tpu.matmul %14, %15, %cst_12 {dimension_numbers = #tpu.dot_dimension_numbers<[1], [0], [0], [1], [0, 0, 1, 1], [], []>} : vector<8x32xf32>, vector<32x32xf32>, vector<8x32xf32> -> vector<8x32xf32>
    %c0_13 = arith.constant 0 : index
    %c0_14 = arith.constant 0 : index
    %17 = vector.load %arg7[%c0_13, %c0_14] : memref<1x32xf32, #tpu.memory_space<vmem>>, vector<1x32xf32>
    %18 = vector.broadcast %17 : vector<1x32xf32> to vector<8x32xf32>
    %19 = arith.addf %16, %18 : vector<8x32xf32>
    %cst_15 = arith.constant 1.000000e-01 : f32
    %20 = vector.broadcast %cst_15 : f32 to vector<8x32xf32>
    %21 = arith.mulf %20, %19 : vector<8x32xf32>
    %22 = arith.addf %14, %21 : vector<8x32xf32>
    %23 = math.tanh %22 : vector<8x32xf32>
    %c0_16 = arith.constant 0 : index
    %c0_17 = arith.constant 0 : index
    %24 = vector.load %arg8[%c0_16, %c0_17] : memref<32x32xf32, #tpu.memory_space<vmem>>, vector<32x32xf32>
    %cst_18 = arith.constant dense<0.000000e+00> : vector<8x32xf32>
    %25 = tpu.matmul %23, %24, %cst_18 {dimension_numbers = #tpu.dot_dimension_numbers<[1], [0], [0], [1], [0, 0, 1, 1], [], []>} : vector<8x32xf32>, vector<32x32xf32>, vector<8x32xf32> -> vector<8x32xf32>
    %c0_19 = arith.constant 0 : index
    %c0_20 = arith.constant 0 : index
    %26 = vector.load %arg9[%c0_19, %c0_20] : memref<1x32xf32, #tpu.memory_space<vmem>>, vector<1x32xf32>
    %27 = vector.broadcast %26 : vector<1x32xf32> to vector<8x32xf32>
    %28 = arith.addf %25, %27 : vector<8x32xf32>
    %cst_21 = arith.constant 1.000000e-01 : f32
    %29 = vector.broadcast %cst_21 : f32 to vector<8x32xf32>
    %30 = arith.mulf %29, %28 : vector<8x32xf32>
    %31 = arith.addf %23, %30 : vector<8x32xf32>
    %32 = math.tanh %31 : vector<8x32xf32>
    %c0_22 = arith.constant 0 : index
    %c0_23 = arith.constant 0 : index
    %33 = vector.load %arg10[%c0_22, %c0_23] : memref<32x1xf32, #tpu.memory_space<vmem>>, vector<32x1xf32>
    %cst_24 = arith.constant dense<0.000000e+00> : vector<8x1xf32>
    %34 = tpu.matmul %32, %33, %cst_24 {dimension_numbers = #tpu.dot_dimension_numbers<[1], [0], [0], [1], [0, 0, 1, 1], [], []>} : vector<8x32xf32>, vector<32x1xf32>, vector<8x1xf32> -> vector<8x1xf32>
    %c0_25 = arith.constant 0 : index
    %c0_26 = arith.constant 0 : index
    %35 = vector.load %arg11[%c0_25, %c0_26] : memref<1x1xf32, #tpu.memory_space<vmem>>, vector<1x1xf32>
    %36 = vector.broadcast %35 : vector<1x1xf32> to vector<8x1xf32>
    %37 = arith.addf %34, %36 : vector<8x1xf32>
    %cst_27 = arith.constant 1.000000e+00 : f32
    %38 = vector.broadcast %cst_27 : f32 to vector<8x1xf32>
    %39 = arith.subf %38, %0 : vector<8x1xf32>
    %cst_28 = arith.constant 1.000000e+00 : f32
    %40 = vector.broadcast %cst_28 : f32 to vector<8x1xf32>
    %41 = arith.mulf %39, %40 : vector<8x1xf32>
    %42 = arith.mulf %41, %37 : vector<8x1xf32>
    %c0_29 = arith.constant 0 : index
    %c0_30 = arith.constant 0 : index
    %43 = vector.load %arg12[%c0_29, %c0_30] : memref<8x1xf32, #tpu.memory_space<vmem>>, vector<8x1xf32>
    tpu.vector_store %arg12[%c0_29, %c0_30], %42 {strides = array<i32>} : memref<8x1xf32, #tpu.memory_space<vmem>>, vector<8x1xf32>,
    return
  }
  func.func @transform_0(%arg0: i32) -> (i32, i32) {
    %c0_i32 = arith.constant 0 : i32
    %c0_i32_0 = arith.constant 0 : i32
    return %arg0, %c0_i32 : i32, i32
  }
  func.func @transform_1(%arg0: i32) -> (i32, i32) {
    %c0_i32 = arith.constant 0 : i32
    %c0_i32_0 = arith.constant 0 : i32
    return %arg0, %c0_i32 : i32, i32
  }
  func.func @transform_2(%arg0: i32) -> (i32, i32) {
    %c0_i32 = arith.constant 0 : i32
    %c0_i32_0 = arith.constant 0 : i32
    %c0_i32_1 = arith.constant 0 : i32
    return %c0_i32, %c0_i32_0 : i32, i32
  }
  func.func @transform_3(%arg0: i32) -> (i32, i32) {
    %c0_i32 = arith.constant 0 : i32
    %c0_i32_0 = arith.constant 0 : i32
    %c0_i32_1 = arith.constant 0 : i32
    return %c0_i32, %c0_i32_0 : i32, i32
  }
  func.func @transform_4(%arg0: i32) -> (i32, i32) {
    %c0_i32 = arith.constant 0 : i32
    %c0_i32_0 = arith.constant 0 : i32
    %c0_i32_1 = arith.constant 0 : i32
    return %c0_i32, %c0_i32_0 : i32, i32
  }
  func.func @transform_5(%arg0: i32) -> (i32, i32) {
    %c0_i32 = arith.constant 0 : i32
    %c0_i32_0 = arith.constant 0 : i32
    %c0_i32_1 = arith.constant 0 : i32
    return %c0_i32, %c0_i32_0 : i32, i32
  }
  func.func @transform_6(%arg0: i32) -> (i32, i32) {
    %c0_i32 = arith.constant 0 : i32
    %c0_i32_0 = arith.constant 0 : i32
    %c0_i32_1 = arith.constant 0 : i32
    return %c0_i32, %c0_i32_0 : i32, i32
  }
  func.func @transform_7(%arg0: i32) -> (i32, i32) {
    %c0_i32 = arith.constant 0 : i32
    %c0_i32_0 = arith.constant 0 : i32
    %c0_i32_1 = arith.constant 0 : i32
    return %c0_i32, %c0_i32_0 : i32, i32
  }
  func.func @transform_8(%arg0: i32) -> (i32, i32) {
    %c0_i32 = arith.constant 0 : i32
    %c0_i32_0 = arith.constant 0 : i32
    %c0_i32_1 = arith.constant 0 : i32
    return %c0_i32, %c0_i32_0 : i32, i32
  }
  func.func @transform_9(%arg0: i32) -> (i32, i32) {
    %c0_i32 = arith.constant 0 : i32
    %c0_i32_0 = arith.constant 0 : i32
    %c0_i32_1 = arith.constant 0 : i32
    return %c0_i32, %c0_i32_0 : i32, i32
  }
  func.func @transform_10(%arg0: i32) -> (i32, i32) {
    %c0_i32 = arith.constant 0 : i32
    %c0_i32_0 = arith.constant 0 : i32
    %c0_i32_1 = arith.constant 0 : i32
    return %c0_i32, %c0_i32_0 : i32, i32
  }
  func.func @transform_11(%arg0: i32) -> (i32, i32) {
    %c0_i32 = arith.constant 0 : i32
    %c0_i32_0 = arith.constant 0 : i32
    return %arg0, %c0_i32 : i32, i32
  }
}

</mosaic_0001>

<bundles_post_ra>
// kernel: tpu_custom_call.1
= control target key start
LH: loop header
LB: loop body
LE: loop exit
PB: predicated region body
PF: predicated region fallthrough
CT: control target
= control target key end

     0   :  { %s748_s0 = inlined_call_operand.vmem [shape: f32[8,1], index: 0, kind: input, shape index: {}]   ;;  %s749_s1 = inlined_call_operand.vmem [shape: f32[8,4], index: 1, kind: input, shape index: {}]   ;;  %s750_s2 = inlined_call_operand.vmem [shape: f32[1,32], index: 2, kind: input, shape index: {}]   ;;  %s751_s3 = inlined_call_operand.hbm [shape: f32[4,32], index: 3, kind: input, shape index: {}]   ;;  %s752_s4 = inlined_call_operand.hbm [shape: f32[1,32], index: 4, kind: input, shape index: {}]   ;;  %s753_s5 = inlined_call_operand.vmem [shape: f32[32,32], index: 5, kind: input, shape index: {}]   ;;  %s754_s6 = inlined_call_operand.hbm [shape: f32[1,32], index: 6, kind: input, shape index: {}]   ;;  %s755_s7 = inlined_call_operand.vmem [shape: f32[32,32], index: 7, kind: input, shape index: {}]   ;;  %s756_s8 = inlined_call_operand.vmem [shape: f32[1,32], index: 8, kind: input, shape index: {}]   ;;  %s757_s9 = inlined_call_operand.vmem [shape: f32[32,1], index: 9, kind: input, shape index: {}]   ;;  %s758_s10 = inlined_call_operand.<no memory space> [shape: f32[1,1], index: 10, kind: input, shape index: {}]   ;;  %s759_s11 = inlined_call_operand.vmem [shape: f32[8,1], index: 11, kind: output, shape index: {}]  }
   0x1   :  { %v16_v0 = vstv %s758_s10 }
   0x2   :  { %17 = vst [vmem:[#allocation2] sm:$0x1] %v16_v0 }
   0x3   :  { %18 = vsyncpa [#allocation4], 0 }
   0x4   :  { %19 = vsyncpa [#allocation6], 0  ;;  %s591_s19 = smov [#allocation5]   ;;  %s592_s21 = smov [#allocation3]  }
   0x5   :  { %s42_s20 = sshll.u32 %s591_s19, 4  ;;  %s32_s22 = sshll.u32 %s592_s21, 4  ;;  %s43_s20 = int_to_ptr.vmem [resolvable:$true] %s42_s20  ;;  %s33_s22 = int_to_ptr.vmem [resolvable:$true] %s32_s22 }
   0x6   :  { %s535_s23 = scalar_lea.vmem %s43_s20, 16  ;;  %s539_s24 = scalar_lea.vmem %s43_s20, 32 }
   0x7   :  { %p536_p0 = scmp.ne.s32.totalorder %s43_s20, %s535_s23  ;;  %p540_p1 = scmp.lt.s32.totalorder %s43_s20, %s43_s20 }
   0x8   :  { %p541_p2 = scmp.lt.s32.totalorder %s539_s24, %s535_s23 }
   0xa   :  { %p542_p3 = por %p541_p2, %p540_p1 }
   0xc   :  { %p543_p4 = pnand %p542_p3, %p536_p0 }
   0xe   :  { %546 = shalt.err (!%p543_p4)
}
   0xf   :  { %45 = dma.hbm_to_vmem [thread:$0]  %s752_s4, 16, %s43_s20, [#allocation6]  }
  0x10   :  { %s555_s10 = scalar_lea.vmem %s33_s22, 64  ;;  %p560_p6 = scmp.lt.s32.totalorder %s33_s22, %s33_s22 }
  0x11   :  { %p556_p5 = scmp.ne.s32.totalorder %s33_s22, %s555_s10  ;;  %p561_p7 = scmp.lt.s32.totalorder %s555_s10, %s555_s10 }
  0x13   :  { %p562_p8 = por %p561_p7, %p560_p6 }
  0x15   :  { %p563_p9 = pnand %p562_p8, %p556_p5 }
  0x17   :  { %566 = shalt.err (!%p563_p9)
}
  0x18   :  { %35 = dma.hbm_to_vmem [thread:$0]  %s751_s3, 64, %s33_s22, [#allocation4]  }
  0x19   :  { %s593_s29 = smov [#allocation7]  }
  0x1a   :  { %s54_s30 = sshll.u32 %s593_s29, 4  ;;  %s55_s30 = int_to_ptr.vmem [resolvable:$true] %s54_s30 }
  0x1b   :  { %s575_s12 = scalar_lea.vmem %s55_s30, 16  ;;  %s579_s13 = scalar_lea.vmem %s55_s30, 32 }
  0x1c   :  { %p576_p10 = scmp.ne.s32.totalorder %s55_s30, %s575_s12  ;;  %p580_p11 = scmp.lt.s32.totalorder %s55_s30, %s55_s30 }
  0x1d   :  { %p581_p12 = scmp.lt.s32.totalorder %s579_s13, %s575_s12 }
  0x1f   :  { %p582_p13 = por %p581_p12, %p580_p11 }
  0x21   :  { %p583_p0 = pnand %p582_p13, %p576_p10 }
  0x23   :  { %586 = shalt.err (!%p583_p0)
}
  0x24   :  { %57 = dma.hbm_to_vmem [thread:$0]  %s754_s6, 16, %s55_s30, [#allocation6]  }
  0x25   :  { %587 = dma.done.wait [#allocation4], 64  }
  0x26   :  { %588 = vsyncadd [#allocation4], 4294967232 }
  0x27   :  { %589 = dma.done.wait [#allocation6], 32  }
  0x28   :  { %590 = vsyncadd [#allocation6], 4294967264  ;;  %v594_v1 = vmov 0.0   ;;  %vm595_vm0 = vmmov 0   ;;  %v596_v2 = vmov 0   ;;  %vm96_vm1 = vcmask 1043456  }
  0x29   :  { %476 = vmatprep.subr.mxu0 %v594_v1  ;;  %478 = vmatprep.mubr.msk.f32.mxu0 %vm595_vm0, %v594_v1  ;;  %vm92_vm2 = vcmask 31744   ;;  %v77_v3 = vld [vmem:[#allocation3] sm:$0xf]  ;;  %v182_v7 = vld [vmem:[%s753_s5 + $0x18] sm:$0xff]  ;;  %v181_v8 = vld [vmem:[%s753_s5 + $0x10] sm:$0xff]  ;;  %vm190_vm3 = vcmask 261120  }
  0x2a   :  { %520 = vset.pattern.permute.xlu0 %v596_v2  ;;  %481 = vmatprep.subr.mxu1 %v594_v1  ;;  %v76_v4 = vld [vmem:[%s749_s1] sm:$0xff]  ;;  %v180_v9 = vld [vmem:[%s753_s5 + $0x8] sm:$0xff]  ;;  %v270_v20 = vld [vmem:[%s755_s7 + $0x18] sm:$0xff]  ;;  %vm440_vm4 = vcmask 7168  }
  0x2b   :  { %489 = vmatprep.mubr.msk.f32.mxu1 %vm595_vm0, %v594_v1  ;;  %v681_v5 = vld [vmem:[%s748_s0] sm:$0xff]  ;;  %477 = vmatpush3.msk.msra.mxu0 %vm96_vm1, %v77_v3  ;;  %v269_v21 = vld [vmem:[%s755_s7 + $0x10] sm:$0xff]  ;;  %v268_v22 = vld [vmem:[%s755_s7 + $0x8] sm:$0xff] }
  0x2c   :  { %v448_v6 = vadd.f32 -0.5, %v681_v5  ;;  %479 = vmatmul.mubr.msk.f32.vlgmr.msra.gmra.mxu0 %vm92_vm2, %v76_v4  ;;  %492 = vmatprep.subr.mxu0 %v594_v1  ;;  %v179_v10 = vld [vmem:[%s753_s5] sm:$0xff]  ;;  %v357_v31 = vld [vmem:[%s757_s9 + $0x18] sm:$0xff]  ;;  %v356_v32 = vld [vmem:[%s757_s9 + $0x10] sm:$0xff]  ;;  %v438_v43 = vsub.f32 1.0, %v681_v5 }
  0x2d   :  { %500 = vmatprep.mubr.msk.f32.mxu0 %vm595_vm0, %v594_v1  ;;  %482 = vmatpush3.msra.mxu1 %v182_v7  ;;  %v449_v11 = vld [vmem:[%s750_s2] ss:$0 sm:$0xff]  ;;  %v452_v15 = vld [vmem:[#allocation5] ss:$0 sm:$0xff]  ;;  %v453_v24 = vld [vmem:[#allocation7] ss:$0 sm:$0xff] }
  0x2e   :  { %82 = vperm.xlu0 %520, %v448_v6   ;;  %483 = vmatprep.subr.mxu1 %v594_v1  ;;  %v267_v23 = vld [vmem:[%s755_s7] sm:$0xff]  ;;  %v355_v33 = vld [vmem:[%s757_s9 + $0x8] sm:$0xff] }
  0x2f   :  { %484 = vmatpush3.msra.mxu1 %v181_v8  ;;  %493 = vmatpush3.msra.mxu0 %v270_v20  ;;  %v354_v34 = vld [vmem:[%s757_s9] sm:$0xff] }
  0x30   :  { %485 = vmatprep.subr.mxu1 %v594_v1  ;;  %494 = vmatprep.subr.mxu0 %v594_v1  ;;  %v455_v35 = vld [vmem:[%s756_s8] ss:$0 sm:$0xff] }
  0x31   :  { %486 = vmatpush3.msra.mxu1 %v180_v9  ;;  %495 = vmatpush3.msra.mxu0 %v269_v21  ;;  %v457_v42 = vld [vmem:[#allocation2] ss:$0 sm:$0xff] }
  0x32   :  { %487 = vmatprep.subr.mxu1 %v594_v1  ;;  %496 = vmatprep.subr.mxu0 %v594_v1 }
  0x33   :  { %488 = vmatpush3.msra.mxu1 %v179_v10  ;;  %497 = vmatpush3.msra.mxu0 %v268_v22 }
  0x34   :  { %503 = vmatprep.subr.mxu1 %v594_v1  ;;  %498 = vmatprep.subr.mxu0 %v594_v1 }
  0x35   :  { %499 = vmatpush3.msra.mxu0 %v267_v23 }
  0xa9   :  { %v83_v12 = vpop.permute.xlu0 %82 }
  0xaa   :  { %v91_v13 = vmul.f32 %v449_v11, %v83_v12 }
  0xec   :  { %v166_v14 = vpop.f32.mrf.mxu0 }
  0xed   :  { %v167_v16 = vadd.f32 %v166_v14, %v91_v13 }
  0xee   :  { %v480_v17 = vpop.f32.mrf.mxu0 }
  0xef   :  { %v177_v18 = vadd.f32 %v452_v15, %v167_v16 }
  0xf1   :  { %521 = vtanh.f32 %v177_v18 }
  0xfe   :  { %v522_v19 = vpop.eup %521 }
  0xff   :  { %490 = vmatmul.mubr.msk.f32.vlgmr.msra.gmra.mxu1 %vm190_vm3, %v522_v19 }
 0x100   :  { %511 = vmatprep.mubr.msk.f32.mxu1 %vm595_vm0, %v594_v1  ;;  %504 = vmatpush3.msra.mxu1 %v357_v31 }
 0x101   :  { %505 = vmatprep.subr.mxu1 %v594_v1 }
 0x102   :  { %506 = vmatpush3.msra.mxu1 %v356_v32 }
 0x103   :  { %507 = vmatprep.subr.mxu1 %v594_v1 }
 0x104   :  { %508 = vmatpush3.msra.mxu1 %v355_v33 }
 0x105   :  { %509 = vmatprep.subr.mxu1 %v594_v1 }
 0x106   :  { %510 = vmatpush3.msra.mxu1 %v354_v34 }
 0x1bf   :  { %v260_v25 = vpop.f32.mrf.mxu1 }
 0x1c0   :  { %v261_v26 = vadd.f32 %v453_v24, %v260_v25 }
 0x1c1   :  { %v491_v27 = vpop.f32.mrf.mxu1 }
 0x1c2   :  { %v264_v28 = vmul.f32 0.1, %v261_v26 }
 0x1c4   :  { %v265_v29 = vadd.f32 %v522_v19, %v264_v28 }
 0x1c6   :  { %523 = vtanh.f32 %v265_v29 }
 0x1d3   :  { %v524_v30 = vpop.eup %523 }
 0x1d4   :  { %501 = vmatmul.mubr.msk.f32.vlgmr.msra.gmra.mxu0 %vm190_vm3, %v524_v30 }
 0x294   :  { %v347_v36 = vpop.f32.mrf.mxu0 }
 0x295   :  { %v348_v37 = vadd.f32 %v455_v35, %v347_v36 }
 0x296   :  { %v502_v38 = vpop.f32.mrf.mxu0 }
 0x297   :  { %v351_v39 = vmul.f32 0.1, %v348_v37 }
 0x299   :  { %v352_v40 = vadd.f32 %v524_v30, %v351_v39 }
 0x29b   :  { %525 = vtanh.f32 %v352_v40 }
 0x2a8   :  { %v526_v41 = vpop.eup %525 }
 0x2a9   :  { %512 = vmatmul.mubr.msk.f32.vlgmr.msra.gmra.mxu1 %vm190_vm3, %v526_v41 }
 0x369   :  { %v434_v44 = vpop.f32.mrf.mxu1 }
 0x36a   :  { %v435_v45 = vadd.f32 %v457_v42, %v434_v44 }
 0x36b   :  { %v513_v46 = vpop.f32.mrf.mxu1 }
 0x36c   :  { %v439_v47 = vmul.f32 %v438_v43, %v435_v45 }
 0x36e   :  { %441 = vst.msk [vmem:[%s759_s11] sm:$0xff] %vm440_vm4, %v439_v47 }
 0x36f   :  { %446 = vsyncpa [#allocation4], 1 }
 0x370   :  { %447 = vsyncpa [#allocation6], 1 }

</bundles_post_ra>
